<compile_context>
chip_gen: v5e
topology: v5e:2x2
jax: 0.10.0
libtpu: 0.0.40
codegen_flags: <defaults>
</compile_context>

<pallas_src>
import functools

import jax
import jax.numpy as jnp
from jax.experimental import pallas as pl
from jax.experimental.pallas import tpu as pltpu


def _round_up(x, m):
    return (x + m - 1) // m * m


def _mxu_lane_multiple():
    """256-wide tiles for v6e/v7x MXU, 128 for v5e and older."""
    try:
        kind = jax.devices()[0].device_kind.lower()
    except Exception:
        return 128
    if "v6" in kind or "v7" in kind:
        return 256
    return 128


# ---------------------------------------------------------------------------
# Fused kernel: one M tile flows through every layer.
#   refs = [x, w_0..w_{L-1}, b_0..b_{L-1}, out]
#   y_i = relu(h_{i-1} @ W_i + b_i)   (no relu on the last layer)
#   bf16 operands on the MXU, f32 bias/ReLU epilogue, only the final f32
#   result is stored to HBM.
# ---------------------------------------------------------------------------
def _fused_mlp_kernel(*refs, n_layers):
    x_ref = refs[0]
    w_refs = refs[1:1 + n_layers]
    b_refs = refs[1 + n_layers:1 + 2 * n_layers]
    o_ref = refs[1 + 2 * n_layers]

    h = x_ref[...]                                     # bf16 (bm, Kp0)
    for i in range(n_layers):
        y = jnp.dot(h, w_refs[i][...],
                    preferred_element_type=jnp.float32)
        y = y + b_refs[i][...]                         # f32 bias add
        if i < n_layers - 1:
            y = jnp.maximum(y, 0.0)                    # ReLU
            h = y.astype(jnp.bfloat16)                 # back to bf16 for next MXU op
        else:
            o_ref[...] = y.astype(o_ref.dtype)


def fused_mlp_padded(x_p, ws, bs):
    """x_p: [Mp, Kp0] bf16 (pre-padded). ws[i]: [Kp_i, Np_i] bf16. bs[i]: [1, Np_i] f32."""
    mp, kp0 = x_p.shape
    n_layers = len(ws)
    np_out = ws[-1].shape[1]

    bm = mp if mp <= 256 else 128                      # single tile for small batch
    assert mp % bm == 0
    grid = (mp // bm,)

    in_specs = [pl.BlockSpec((bm, kp0), lambda i: (i, 0))]
    # Full-array blocks with constant index maps -> weights/biases DMA'd once,
    # resident in VMEM across all M tiles.
    for w in ws:
        in_specs.append(pl.BlockSpec(w.shape, lambda i: (0, 0)))
    for b in bs:
        in_specs.append(pl.BlockSpec(b.shape, lambda i: (0, 0)))
    out_specs = pl.BlockSpec((bm, np_out), lambda i: (i, 0))

    # Explicit VMEM budget (kept well under v7x's 64 MiB physical VMEM).
    w_bytes = sum(int(w.size) * 2 for w in ws)
    b_bytes = sum(int(b.size) * 4 for b in bs)
    io_bytes = 2 * (bm * kp0 * 2 + bm * np_out * 4)    # double-buffered in/out tiles
    act_bytes = 4 * bm * max(w.shape[1] for w in ws) * 4
    vmem_limit = int(min(60 * 2**20,
                         max(16 * 2**20,
                             2 * (w_bytes + b_bytes) + io_bytes + act_bytes)))

    return pl.pallas_call(
        functools.partial(_fused_mlp_kernel, n_layers=n_layers),
        out_shape=jax.ShapeDtypeStruct((mp, np_out), jnp.float32),
        grid=grid,
        in_specs=in_specs,
        out_specs=out_specs,
        compiler_params=pltpu.CompilerParams(
            dimension_semantics=("parallel",),
            vmem_limit_bytes=vmem_limit),
    )(x_p, *ws, *bs)


# ---------------------------------------------------------------------------
# Parameters: torch.nn.Linear-style init, then ONE-TIME prep
# (transpose / zero-pad to MXU-width multiples / bf16 cast) off the hot path.
# ---------------------------------------------------------------------------
def init_params(key, n_inputs, n_outputs, hparams):
    width = hparams.get("mlp_width", 500)
    depth = hparams.get("mlp_depth", 5)
    dims = [(n_inputs, width)] + [(width, width)] * (depth - 2) + [(width, n_outputs)]
    layers = []
    for fan_in, fan_out in dims:
        key, kw, kb = jax.random.split(key, 3)
        bound = fan_in ** -0.5
        w = jax.random.uniform(kw, (fan_out, fan_in), jnp.float32, -bound, bound)
        b = jax.random.uniform(kb, (fan_out,), jnp.float32, -bound, bound)
        layers.append((w, b))
    return layers


def prepare_params(layers, lane_mult):
    """Transpose to [K, N], zero-pad K/N to lane_mult multiples, cast W to bf16."""
    ws, bs = [], []
    for w, b in layers:
        out_f, in_f = w.shape
        kp = _round_up(in_f, lane_mult)
        np_ = _round_up(out_f, lane_mult)
        w_p = jnp.zeros((kp, np_), jnp.bfloat16).at[:in_f, :out_f].set(
            w.T.astype(jnp.bfloat16))
        b_p = jnp.zeros((1, np_), jnp.float32).at[0, :out_f].set(b)
        ws.append(w_p)
        bs.append(b_p)
    return {"w": ws, "b": bs}


# ---------------------------------------------------------------------------
# MLP forward (default-hparams semantics of the torch module)
# ---------------------------------------------------------------------------
def mlp_forward(x, prepped, *, n_outputs, hparams):
    assert hparams.get("activation", "relu") == "relu"
    # TODO(synk): train-mode nn.Dropout (p>0) and the optional mlp_bn / mlp_ln
    # branches are off in the default hparams and not implemented here.
    ws, bs = prepped["w"], prepped["b"]

    m = x.shape[0]
    x2 = x.reshape(m, -1)                       # x.view(x.shape[0], -1)
    k = x2.shape[1]
    kp0 = ws[0].shape[0]

    if m <= 256:
        mp = _round_up(max(m, 16), 16)          # one bf16-sublane-aligned tile
    else:
        mp = _round_up(m, 128)                  # bm=128 tiles, caps padding waste

    h = jnp.pad(x2.astype(jnp.bfloat16), ((0, mp - m), (0, kp0 - k)))
    out = fused_mlp_padded(h, ws, bs)
    return out[:m, :n_outputs]


if __name__ == "__main__":
    key = jax.random.PRNGKey(0)
    k_x, k_p = jax.random.split(key)

    batch, C, H, W = 2, 4, 16, 16               # x.view(batch, -1) -> n_inputs = 1024
    n_inputs = C * H * W
    n_outputs = 16
    hparams = {"mlp_width": 128, "mlp_depth": 5, "activation": "relu",
               "mlp_dropout": 0.0, "mlp_bn": 0, "mlp_ln": 0}

    x = jax.random.normal(k_x, (batch, C, H, W), jnp.float32)
    layers = init_params(k_p, n_inputs, n_outputs, hparams)
    prepped = prepare_params(layers, _mxu_lane_multiple())   # one-time prep

    fwd = jax.jit(functools.partial(mlp_forward, n_outputs=n_outputs, hparams=hparams))
    out = jax.block_until_ready(fwd(x, prepped))

    # pure-JAX (f32) reference
    ref = x.reshape(batch, -1)
    for i, (w, b) in enumerate(layers):
        ref = ref @ w.T + b
        if i < len(layers) - 1:
            ref = jnp.maximum(ref, 0.0)

    assert out.shape == (batch, n_outputs), out.shape
    assert bool(jnp.all(jnp.isfinite(out)))
    assert bool(jnp.max(jnp.abs(out - ref)) < 0.1), float(jnp.max(jnp.abs(out - ref)))
    print("KERNEL_OK")
</pallas_src>

<mosaic_0001>
module attributes {stable_mosaic.version = 11 : i64} {
  func.func @_fused_mlp_kernel(%arg0: i32, %arg1: memref<16x1024xbf16, #tpu.memory_space<vmem>>, %arg2: memref<1024x128xbf16, #tpu.memory_space<vmem>>, %arg3: memref<128x128xbf16, #tpu.memory_space<vmem>>, %arg4: memref<128x128xbf16, #tpu.memory_space<vmem>>, %arg5: memref<128x128xbf16, #tpu.memory_space<vmem>>, %arg6: memref<128x128xbf16, #tpu.memory_space<vmem>>, %arg7: memref<1x128xf32, #tpu.memory_space<vmem>>, %arg8: memref<1x128xf32, #tpu.memory_space<vmem>>, %arg9: memref<1x128xf32, #tpu.memory_space<vmem>>, %arg10: memref<1x128xf32, #tpu.memory_space<vmem>>, %arg11: memref<1x128xf32, #tpu.memory_space<vmem>>, %arg12: memref<16x128xf32, #tpu.memory_space<vmem>>) attributes {dimension_semantics = [#tpu.dimension_semantics<parallel>], iteration_bounds = array<i64: 1>, scalar_prefetch = 0 : i64, scratch_operands = 0 : i64, tpu.core_type = #tpu.core_type<tc>, window_params = [{transform_indices = @transform_0, window_bounds = array<i64: 16, 1024>}, {pipeline_mode = #tpu.pipeline_mode<synchronous>, transform_indices = @transform_1, window_bounds = array<i64: 1024, 128>}, {pipeline_mode = #tpu.pipeline_mode<synchronous>, transform_indices = @transform_2, window_bounds = array<i64: 128, 128>}, {pipeline_mode = #tpu.pipeline_mode<synchronous>, transform_indices = @transform_3, window_bounds = array<i64: 128, 128>}, {pipeline_mode = #tpu.pipeline_mode<synchronous>, transform_indices = @transform_4, window_bounds = array<i64: 128, 128>}, {pipeline_mode = #tpu.pipeline_mode<synchronous>, transform_indices = @transform_5, window_bounds = array<i64: 128, 128>}, {pipeline_mode = #tpu.pipeline_mode<synchronous>, transform_indices = @transform_6, window_bounds = array<i64: 1, 128>}, {pipeline_mode = #tpu.pipeline_mode<synchronous>, transform_indices = @transform_7, window_bounds = array<i64: 1, 128>}, {pipeline_mode = #tpu.pipeline_mode<synchronous>, transform_indices = @transform_8, window_bounds = array<i64: 1, 128>}, {pipeline_mode = #tpu.pipeline_mode<synchronous>, transform_indices = @transform_9, window_bounds = array<i64: 1, 128>}, {pipeline_mode = #tpu.pipeline_mode<synchronous>, transform_indices = @transform_10, window_bounds = array<i64: 1, 128>}, {transform_indices = @transform_11, window_bounds = array<i64: 16, 128>}]} {
    %c0 = arith.constant 0 : index
    %c0_0 = arith.constant 0 : index
    %0 = vector.load %arg1[%c0, %c0_0] : memref<16x1024xbf16, #tpu.memory_space<vmem>>, vector<16x1024xbf16>
    %c0_1 = arith.constant 0 : index
    %c0_2 = arith.constant 0 : index
    %1 = vector.load %arg2[%c0_1, %c0_2] : memref<1024x128xbf16, #tpu.memory_space<vmem>>, vector<1024x128xbf16>
    %cst = arith.constant dense<0.000000e+00> : vector<16x128xf32>
    %2 = tpu.matmul %0, %1, %cst {dimension_numbers = #tpu.dot_dimension_numbers<[1], [0], [0], [1], [0, 0, 1, 1], [], []>} : vector<16x1024xbf16>, vector<1024x128xbf16>, vector<16x128xf32> -> vector<16x128xf32>
    %c0_3 = arith.constant 0 : index
    %c0_4 = arith.constant 0 : index
    %3 = vector.load %arg7[%c0_3, %c0_4] : memref<1x128xf32, #tpu.memory_space<vmem>>, vector<1x128xf32>
    %4 = vector.broadcast %3 : vector<1x128xf32> to vector<16x128xf32>
    %5 = arith.addf %2, %4 : vector<16x128xf32>
    %cst_5 = arith.constant 0.000000e+00 : f32
    %6 = vector.broadcast %cst_5 : f32 to vector<16x128xf32>
    %7 = arith.maximumf %5, %6 : vector<16x128xf32>
    %8 = arith.truncf %7 : vector<16x128xf32> to vector<16x128xbf16>
    %c0_6 = arith.constant 0 : index
    %c0_7 = arith.constant 0 : index
    %9 = vector.load %arg3[%c0_6, %c0_7] : memref<128x128xbf16, #tpu.memory_space<vmem>>, vector<128x128xbf16>
    %cst_8 = arith.constant dense<0.000000e+00> : vector<16x128xf32>
    %10 = tpu.matmul %8, %9, %cst_8 {dimension_numbers = #tpu.dot_dimension_numbers<[1], [0], [0], [1], [0, 0, 1, 1], [], []>} : vector<16x128xbf16>, vector<128x128xbf16>, vector<16x128xf32> -> vector<16x128xf32>
    %c0_9 = arith.constant 0 : index
    %c0_10 = arith.constant 0 : index
    %11 = vector.load %arg8[%c0_9, %c0_10] : memref<1x128xf32, #tpu.memory_space<vmem>>, vector<1x128xf32>
    %12 = vector.broadcast %11 : vector<1x128xf32> to vector<16x128xf32>
    %13 = arith.addf %10, %12 : vector<16x128xf32>
    %cst_11 = arith.constant 0.000000e+00 : f32
    %14 = vector.broadcast %cst_11 : f32 to vector<16x128xf32>
    %15 = arith.maximumf %13, %14 : vector<16x128xf32>
    %16 = arith.truncf %15 : vector<16x128xf32> to vector<16x128xbf16>
    %c0_12 = arith.constant 0 : index
    %c0_13 = arith.constant 0 : index
    %17 = vector.load %arg4[%c0_12, %c0_13] : memref<128x128xbf16, #tpu.memory_space<vmem>>, vector<128x128xbf16>
    %cst_14 = arith.constant dense<0.000000e+00> : vector<16x128xf32>
    %18 = tpu.matmul %16, %17, %cst_14 {dimension_numbers = #tpu.dot_dimension_numbers<[1], [0], [0], [1], [0, 0, 1, 1], [], []>} : vector<16x128xbf16>, vector<128x128xbf16>, vector<16x128xf32> -> vector<16x128xf32>
    %c0_15 = arith.constant 0 : index
    %c0_16 = arith.constant 0 : index
    %19 = vector.load %arg9[%c0_15, %c0_16] : memref<1x128xf32, #tpu.memory_space<vmem>>, vector<1x128xf32>
    %20 = vector.broadcast %19 : vector<1x128xf32> to vector<16x128xf32>
    %21 = arith.addf %18, %20 : vector<16x128xf32>
    %cst_17 = arith.constant 0.000000e+00 : f32
    %22 = vector.broadcast %cst_17 : f32 to vector<16x128xf32>
    %23 = arith.maximumf %21, %22 : vector<16x128xf32>
    %24 = arith.truncf %23 : vector<16x128xf32> to vector<16x128xbf16>
    %c0_18 = arith.constant 0 : index
    %c0_19 = arith.constant 0 : index
    %25 = vector.load %arg5[%c0_18, %c0_19] : memref<128x128xbf16, #tpu.memory_space<vmem>>, vector<128x128xbf16>
    %cst_20 = arith.constant dense<0.000000e+00> : vector<16x128xf32>
    %26 = tpu.matmul %24, %25, %cst_20 {dimension_numbers = #tpu.dot_dimension_numbers<[1], [0], [0], [1], [0, 0, 1, 1], [], []>} : vector<16x128xbf16>, vector<128x128xbf16>, vector<16x128xf32> -> vector<16x128xf32>
    %c0_21 = arith.constant 0 : index
    %c0_22 = arith.constant 0 : index
    %27 = vector.load %arg10[%c0_21, %c0_22] : memref<1x128xf32, #tpu.memory_space<vmem>>, vector<1x128xf32>
    %28 = vector.broadcast %27 : vector<1x128xf32> to vector<16x128xf32>
    %29 = arith.addf %26, %28 : vector<16x128xf32>
    %cst_23 = arith.constant 0.000000e+00 : f32
    %30 = vector.broadcast %cst_23 : f32 to vector<16x128xf32>
    %31 = arith.maximumf %29, %30 : vector<16x128xf32>
    %32 = arith.truncf %31 : vector<16x128xf32> to vector<16x128xbf16>
    %c0_24 = arith.constant 0 : index
    %c0_25 = arith.constant 0 : index
    %33 = vector.load %arg6[%c0_24, %c0_25] : memref<128x128xbf16, #tpu.memory_space<vmem>>, vector<128x128xbf16>
    %cst_26 = arith.constant dense<0.000000e+00> : vector<16x128xf32>
    %34 = tpu.matmul %32, %33, %cst_26 {dimension_numbers = #tpu.dot_dimension_numbers<[1], [0], [0], [1], [0, 0, 1, 1], [], []>} : vector<16x128xbf16>, vector<128x128xbf16>, vector<16x128xf32> -> vector<16x128xf32>
    %c0_27 = arith.constant 0 : index
    %c0_28 = arith.constant 0 : index
    %35 = vector.load %arg11[%c0_27, %c0_28] : memref<1x128xf32, #tpu.memory_space<vmem>>, vector<1x128xf32>
    %36 = vector.broadcast %35 : vector<1x128xf32> to vector<16x128xf32>
    %37 = arith.addf %34, %36 : vector<16x128xf32>
    %c0_29 = arith.constant 0 : index
    %c0_30 = arith.constant 0 : index
    %38 = vector.load %arg12[%c0_29, %c0_30] : memref<16x128xf32, #tpu.memory_space<vmem>>, vector<16x128xf32>
    tpu.vector_store %arg12[%c0_29, %c0_30], %37 {strides = array<i32>} : memref<16x128xf32, #tpu.memory_space<vmem>>, vector<16x128xf32>,
    return
  }
  func.func @transform_0(%arg0: i32) -> (i32, i32) {
    %c0_i32 = arith.constant 0 : i32
    %c0_i32_0 = arith.constant 0 : i32
    return %arg0, %c0_i32 : i32, i32
  }
  func.func @transform_1(%arg0: i32) -> (i32, i32) {
    %c0_i32 = arith.constant 0 : i32
    %c0_i32_0 = arith.constant 0 : i32
    %c0_i32_1 = arith.constant 0 : i32
    return %c0_i32, %c0_i32_0 : i32, i32
  }
  func.func @transform_2(%arg0: i32) -> (i32, i32) {
    %c0_i32 = arith.constant 0 : i32
    %c0_i32_0 = arith.constant 0 : i32
    %c0_i32_1 = arith.constant 0 : i32
    return %c0_i32, %c0_i32_0 : i32, i32
  }
  func.func @transform_3(%arg0: i32) -> (i32, i32) {
    %c0_i32 = arith.constant 0 : i32
    %c0_i32_0 = arith.constant 0 : i32
    %c0_i32_1 = arith.constant 0 : i32
    return %c0_i32, %c0_i32_0 : i32, i32
  }
  func.func @transform_4(%arg0: i32) -> (i32, i32) {
    %c0_i32 = arith.constant 0 : i32
    %c0_i32_0 = arith.constant 0 : i32
    %c0_i32_1 = arith.constant 0 : i32
    return %c0_i32, %c0_i32_0 : i32, i32
  }
  func.func @transform_5(%arg0: i32) -> (i32, i32) {
    %c0_i32 = arith.constant 0 : i32
    %c0_i32_0 = arith.constant 0 : i32
    %c0_i32_1 = arith.constant 0 : i32
    return %c0_i32, %c0_i32_0 : i32, i32
  }
  func.func @transform_6(%arg0: i32) -> (i32, i32) {
    %c0_i32 = arith.constant 0 : i32
    %c0_i32_0 = arith.constant 0 : i32
    %c0_i32_1 = arith.constant 0 : i32
    return %c0_i32, %c0_i32_0 : i32, i32
  }
  func.func @transform_7(%arg0: i32) -> (i32, i32) {
    %c0_i32 = arith.constant 0 : i32
    %c0_i32_0 = arith.constant 0 : i32
    %c0_i32_1 = arith.constant 0 : i32
    return %c0_i32, %c0_i32_0 : i32, i32
  }
  func.func @transform_8(%arg0: i32) -> (i32, i32) {
    %c0_i32 = arith.constant 0 : i32
    %c0_i32_0 = arith.constant 0 : i32
    %c0_i32_1 = arith.constant 0 : i32
    return %c0_i32, %c0_i32_0 : i32, i32
  }
  func.func @transform_9(%arg0: i32) -> (i32, i32) {
    %c0_i32 = arith.constant 0 : i32
    %c0_i32_0 = arith.constant 0 : i32
    %c0_i32_1 = arith.constant 0 : i32
    return %c0_i32, %c0_i32_0 : i32, i32
  }
  func.func @transform_10(%arg0: i32) -> (i32, i32) {
    %c0_i32 = arith.constant 0 : i32
    %c0_i32_0 = arith.constant 0 : i32
    %c0_i32_1 = arith.constant 0 : i32
    return %c0_i32, %c0_i32_0 : i32, i32
  }
  func.func @transform_11(%arg0: i32) -> (i32, i32) {
    %c0_i32 = arith.constant 0 : i32
    %c0_i32_0 = arith.constant 0 : i32
    return %arg0, %c0_i32 : i32, i32
  }
}

</mosaic_0001>

<bundles_post_ra>
// kernel: mlp_forward.1
= control target key start
LH: loop header
LB: loop body
LE: loop exit
PB: predicated region body
PF: predicated region fallthrough
CT: control target
= control target key end

     0   :  { %16 = vsyncpa [#allocation3], 0  ;;  %s1631_s20 = smov [#allocation2]   ;;  %s1632_s22 = smov 64   ;;  %s1862_s0 = inlined_call_operand.vmem [shape: bf16[16,1024], index: 0, kind: input, shape index: {}]   ;;  %s1863_s1 = inlined_call_operand.hbm [shape: bf16[1024,128], index: 1, kind: input, shape index: {}]   ;;  %s1864_s2 = inlined_call_operand.vmem [shape: bf16[128,128], index: 2, kind: input, shape index: {}]   ;;  %s1865_s3 = inlined_call_operand.vmem [shape: bf16[128,128], index: 3, kind: input, shape index: {}]   ;;  %s1866_s4 = inlined_call_operand.vmem [shape: bf16[128,128], index: 4, kind: input, shape index: {}]   ;;  %s1867_s5 = inlined_call_operand.vmem [shape: bf16[128,128], index: 5, kind: input, shape index: {}]   ;;  %s1868_s6 = inlined_call_operand.vmem [shape: f32[1,128], index: 6, kind: input, shape index: {}]   ;;  %s1869_s7 = inlined_call_operand.vmem [shape: f32[1,128], index: 7, kind: input, shape index: {}]   ;;  %s1870_s8 = inlined_call_operand.vmem [shape: f32[1,128], index: 8, kind: input, shape index: {}]   ;;  %s1871_s9 = inlined_call_operand.vmem [shape: f32[1,128], index: 9, kind: input, shape index: {}]   ;;  %s1872_s10 = inlined_call_operand.vmem [shape: f32[1,128], index: 10, kind: input, shape index: {}]   ;;  %s1873_s11 = inlined_call_operand.vmem [shape: f32[16,128], index: 11, kind: output, shape index: {}]  }
   0x1   :  { %s23_s19 = sshll.u32 %s1863_s1, 4  ;;  %s25_s21 = sshll.u32 %s1631_s20, 4  ;;  %s24_s19 = int_to_ptr.hbm [resolvable:$true] %s23_s19  ;;  %s26_s21 = int_to_ptr.vmem [resolvable:$true] %s25_s21 }
   0x2   :  { %s1633_s23 = smov 4  }
   0x3   :  { %31 = dma.hbm_to_vmem [thread:$0]  %s24_s19, 8192, %s26_s21, [#allocation3], %s1632_s22, %s1632_s22, %s1633_s23  }
   0x4   :  { %1629 = dma.done.wait [#allocation3], 8192  }
   0x5   :  { %1630 = vsyncadd [#allocation3], 4294959104  ;;  %v1508_v0 = vld [vmem:[#allocation2 + $0x38] sm:$0xff]  ;;  %v1507_v4 = vld [vmem:[#allocation2 + $0x30] sm:$0xff] }
   0x6   :  { %v1516_v1 = vld [vmem:[#allocation2 + $0x78] sm:$0xff]  ;;  %618 = vmatpush.bf16.msra.mxu0 %v1508_v0  ;;  %v1515_v5 = vld [vmem:[#allocation2 + $0x70] sm:$0xff]  ;;  %v1506_v8 = vld [vmem:[#allocation2 + $0x28] sm:$0xff] }
   0x7   :  { %v1524_v2 = vld [vmem:[#allocation2 + $0xb8] sm:$0xff]  ;;  %632 = vmatpush.bf16.msra.mxu1 %v1516_v1  ;;  %v1523_v6 = vld [vmem:[#allocation2 + $0xb0] sm:$0xff]  ;;  %v1514_v9 = vld [vmem:[#allocation2 + $0x68] sm:$0xff] }
   0x8   :  { %v1532_v3 = vld [vmem:[#allocation2 + $0xf8] sm:$0xff]  ;;  %646 = vmatpush.bf16.msra.mxu2 %v1524_v2  ;;  %v1531_v7 = vld [vmem:[#allocation2 + $0xf0] sm:$0xff]  ;;  %v1522_v10 = vld [vmem:[#allocation2 + $0xa8] sm:$0xff] }
   0x9   :  { %660 = vmatpush.bf16.msra.mxu3 %v1532_v3  ;;  %v1530_v11 = vld [vmem:[#allocation2 + $0xe8] sm:$0xff]  ;;  %v1505_v12 = vld [vmem:[#allocation2 + $0x20] sm:$0xff]  ;;  %v1504_v16 = vld [vmem:[#allocation2 + $0x18] sm:$0xff] }
   0xa   :  { %619 = vmatpush.bf16.msra.mxu0 %v1507_v4  ;;  %v1513_v13 = vld [vmem:[#allocation2 + $0x60] sm:$0xff]  ;;  %v1512_v17 = vld [vmem:[#allocation2 + $0x58] sm:$0xff]  ;;  %v1503_v20 = vld [vmem:[#allocation2 + $0x10] sm:$0xff] }
   0xb   :  { %633 = vmatpush.bf16.msra.mxu1 %v1515_v5  ;;  %v1521_v14 = vld [vmem:[#allocation2 + $0xa0] sm:$0xff]  ;;  %v1520_v18 = vld [vmem:[#allocation2 + $0x98] sm:$0xff]  ;;  %v1511_v21 = vld [vmem:[#allocation2 + $0x50] sm:$0xff] }
   0xc   :  { %647 = vmatpush.bf16.msra.mxu2 %v1523_v6  ;;  %v1529_v15 = vld [vmem:[#allocation2 + $0xe0] sm:$0xff]  ;;  %v1528_v19 = vld [vmem:[#allocation2 + $0xd8] sm:$0xff]  ;;  %v1519_v22 = vld [vmem:[#allocation2 + $0x90] sm:$0xff] }
   0xd   :  { %661 = vmatpush.bf16.msra.mxu3 %v1531_v7  ;;  %v1527_v23 = vld [vmem:[#allocation2 + $0xd0] sm:$0xff]  ;;  %v1502_v24 = vld [vmem:[#allocation2 + $0x8] sm:$0xff]  ;;  %v1501_v28 = vld [vmem:[#allocation2] sm:$0xff] }
   0xe   :  { %620 = vmatpush.bf16.msra.mxu0 %v1506_v8  ;;  %v1510_v25 = vld [vmem:[#allocation2 + $0x48] sm:$0xff]  ;;  %v1509_v29 = vld [vmem:[#allocation2 + $0x40] sm:$0xff]  ;;  %v1540_v32 = vld [vmem:[#allocation2 + $0x138] sm:$0xff] }
   0xf   :  { %634 = vmatpush.bf16.msra.mxu1 %v1514_v9  ;;  %v1518_v26 = vld [vmem:[#allocation2 + $0x88] sm:$0xff]  ;;  %v1517_v30 = vld [vmem:[#allocation2 + $0x80] sm:$0xff]  ;;  %v1548_v33 = vld [vmem:[#allocation2 + $0x178] sm:$0xff] }
  0x10   :  { %648 = vmatpush.bf16.msra.mxu2 %v1522_v10  ;;  %v1526_v27 = vld [vmem:[#allocation2 + $0xc8] sm:$0xff]  ;;  %v1525_v31 = vld [vmem:[#allocation2 + $0xc0] sm:$0xff]  ;;  %v1556_v42 = vld [vmem:[#allocation2 + $0x1b8] sm:$0xff] }
  0x11   :  { %662 = vmatpush.bf16.msra.mxu3 %v1530_v11  ;;  %v1087_v34 = vld [vmem:[%s1862_s0 + $0x8] sm:$0xf]  ;;  %v1079_v36 = vld [vmem:[%s1862_s0] sm:$0xf]  ;;  %v1494_v38 = vld [vmem:[%s1862_s0 + $0xc] sm:$0xf] }
  0x12   :  { %621 = vmatpush.bf16.msra.mxu0 %v1505_v12  ;;  %v1498_v35 = vld [vmem:[%s1862_s0 + $0x24] sm:$0xf0]  ;;  %v1497_v37 = vld [vmem:[%s1862_s0 + $0x1c] sm:$0xf0]  ;;  %v1089_v39 = vld [vmem:[%s1862_s0 + $0x28] sm:$0xf0] }
  0x13   :  { %635 = vmatpush.bf16.msra.mxu1 %v1513_v13  ;;  %v1493_v40 = vld [vmem:[%s1862_s0 + $0x4] sm:$0xf]  ;;  %v1564_v43 = vld [vmem:[#allocation2 + $0x1f8] sm:$0xff]  ;;  %v1088_v44 = vor.u32 %v1498_v35, %v1087_v34  ;;  %v1080_v45 = vor.u32 %v1497_v37, %v1079_v36  ;;  %v1092_v46 = vor.u32 %v1494_v38, %v1089_v39  ;;  %v1539_v48 = vld [vmem:[#allocation2 + $0x130] sm:$0xff] }
  0x14   :  { %649 = vmatpush.bf16.msra.mxu2 %v1521_v14  ;;  %v1081_v41 = vld [vmem:[%s1862_s0 + $0x20] sm:$0xf0]  ;;  %v1547_v49 = vld [vmem:[#allocation2 + $0x170] sm:$0xff]  ;;  %v1538_v52 = vld [vmem:[#allocation2 + $0x128] sm:$0xff] }
  0x15   :  { %663 = vmatpush.bf16.msra.mxu3 %v1529_v15  ;;  %v1084_v47 = vor.u32 %v1493_v40, %v1081_v41  ;;  %v1555_v50 = vld [vmem:[#allocation2 + $0x1b0] sm:$0xff]  ;;  %v1546_v53 = vld [vmem:[#allocation2 + $0x168] sm:$0xff]  ;;  %v1537_v56 = vld [vmem:[#allocation2 + $0x120] sm:$0xff] }
  0x16   :  { %622 = vmatpush.bf16.msra.mxu0 %v1504_v16  ;;  %v1563_v51 = vld [vmem:[#allocation2 + $0x1f0] sm:$0xff]  ;;  %v1554_v54 = vld [vmem:[#allocation2 + $0x1a8] sm:$0xff]  ;;  %v1545_v57 = vld [vmem:[#allocation2 + $0x160] sm:$0xff] }
  0x17   :  { %636 = vmatpush.bf16.msra.mxu1 %v1512_v17  ;;  %v1562_v55 = vld [vmem:[#allocation2 + $0x1e8] sm:$0xff]  ;;  %v1553_v58 = vld [vmem:[#allocation2 + $0x1a0] sm:$0xff]  ;;  %v1536_v60 = vld [vmem:[#allocation2 + $0x118] sm:$0xff] }
  0x18   :  { %650 = vmatpush.bf16.msra.mxu2 %v1520_v18  ;;  %v1561_v59 = vld [vmem:[#allocation2 + $0x1e0] sm:$0xff]  ;;  %v1544_v61 = vld [vmem:[#allocation2 + $0x158] sm:$0xff]  ;;  %v1535_v0 = vld [vmem:[#allocation2 + $0x110] sm:$0xff] }
  0x19   :  { %664 = vmatpush.bf16.msra.mxu3 %v1528_v19  ;;  %v1552_v62 = vld [vmem:[#allocation2 + $0x198] sm:$0xff]  ;;  %v1543_v1 = vld [vmem:[#allocation2 + $0x150] sm:$0xff]  ;;  %v1534_v4 = vld [vmem:[#allocation2 + $0x108] sm:$0xff] }
  0x1a   :  { %623 = vmatpush.bf16.msra.mxu0 %v1503_v20  ;;  %v1560_v63 = vld [vmem:[#allocation2 + $0x1d8] sm:$0xff]  ;;  %v1551_v2 = vld [vmem:[#allocation2 + $0x190] sm:$0xff]  ;;  %v1542_v5 = vld [vmem:[#allocation2 + $0x148] sm:$0xff] }
  0x1b   :  { %637 = vmatpush.bf16.msra.mxu1 %v1511_v21  ;;  %v1559_v3 = vld [vmem:[#allocation2 + $0x1d0] sm:$0xff]  ;;  %v1550_v6 = vld [vmem:[#allocation2 + $0x188] sm:$0xff]  ;;  %v1533_v8 = vld [vmem:[#allocation2 + $0x100] sm:$0xff] }
  0x1c   :  { %651 = vmatpush.bf16.msra.mxu2 %v1519_v22  ;;  %v1558_v7 = vld [vmem:[#allocation2 + $0x1c8] sm:$0xff]  ;;  %v1541_v9 = vld [vmem:[#allocation2 + $0x140] sm:$0xff]  ;;  %v1095_v12 = vld [vmem:[%s1862_s0 + $0x10] sm:$0xf] }
  0x1d   :  { %665 = vmatpush.bf16.msra.mxu3 %v1527_v23  ;;  %v1549_v10 = vld [vmem:[#allocation2 + $0x180] sm:$0xff]  ;;  %v1499_v13 = vld [vmem:[%s1862_s0 + $0x2c] sm:$0xf0]  ;;  %v1495_v14 = vld [vmem:[%s1862_s0 + $0x14] sm:$0xf] }
  0x1e   :  { %624 = vmatpush.bf16.msra.mxu0 %v1502_v24  ;;  %v1557_v11 = vld [vmem:[#allocation2 + $0x1c0] sm:$0xff]  ;;  %v1097_v15 = vld [vmem:[%s1862_s0 + $0x30] sm:$0xf0]  ;;  %v1103_v16 = vld [vmem:[%s1862_s0 + $0x18] sm:$0xf]  ;;  %v1096_v20 = vor.u32 %v1499_v13, %v1095_v12 }
  0x1f   :  { %638 = vmatpush.bf16.msra.mxu1 %v1510_v25  ;;  %v1500_v17 = vld [vmem:[%s1862_s0 + $0x34] sm:$0xf0]  ;;  %v1496_v18 = vld [vmem:[%s1862_s0 + $0x1c] sm:$0xf]  ;;  %v1100_v21 = vor.u32 %v1495_v14, %v1097_v15  ;;  %v1571_v25 = vld [vmem:[%s1864_s2 + $0x30] sm:$0xff] }
  0x20   :  { %652 = vmatpush.bf16.msra.mxu2 %v1518_v26  ;;  %v1105_v19 = vld [vmem:[%s1862_s0 + $0x38] sm:$0xf0]  ;;  %v1104_v22 = vor.u32 %v1500_v17, %v1103_v16  ;;  %v1570_v26 = vld [vmem:[%s1864_s2 + $0x28] sm:$0xff]  ;;  %v1600_v34 = vld [vmem:[%s1868_s6] ss:$0 sm:$0xff] }
  0x21   :  { %666 = vmatpush.bf16.msra.mxu3 %v1526_v27  ;;  %v1108_v23 = vor.u32 %v1496_v18, %v1105_v19  ;;  %v1572_v24 = vld [vmem:[%s1864_s2 + $0x38] sm:$0xff]  ;;  %v1569_v27 = vld [vmem:[%s1864_s2 + $0x20] sm:$0xff]  ;;  %v1579_v40 = vld [vmem:[%s1865_s3 + $0x30] sm:$0xff] }
  0x22   :  { %625 = vmatpush.bf16.msra.mxu0 %v1501_v28  ;;  %v1568_v28 = vld [vmem:[%s1864_s2 + $0x18] sm:$0xff]  ;;  %v1587_v13 = vld [vmem:[%s1866_s4 + $0x30] sm:$0xff]  ;;  %v1586_v14 = vld [vmem:[%s1866_s4 + $0x28] sm:$0xff] }
  0x23   :  { %639 = vmatpush.bf16.msra.mxu1 %v1509_v29  ;;  %v1567_v29 = vld [vmem:[%s1864_s2 + $0x10] sm:$0xff]  ;;  %v1580_v39 = vld [vmem:[%s1865_s3 + $0x38] sm:$0xff]  ;;  %v1585_v15 = vld [vmem:[%s1866_s4 + $0x20] sm:$0xff] }
  0x24   :  { %653 = vmatpush.bf16.msra.mxu2 %v1517_v30  ;;  %v1588_v12 = vld [vmem:[%s1866_s4 + $0x38] sm:$0xff]  ;;  %v1601_v17 = vld [vmem:[%s1869_s7] ss:$0 sm:$0xff] }
  0x25   :  { %667 = vmatpush.bf16.msra.mxu3 %v1525_v31  ;;  %626 = vmatmul.bf16.vlgmr.msra.gmra.mxu0 %v1080_v45  ;;  %v1566_v31 = vld [vmem:[%s1864_s2 + $0x8] sm:$0xff] }
  0x26   :  { %674 = vmatpush.bf16.msrb.mxu0 %v1540_v32  ;;  %640 = vmatmul.bf16.vlgmr.msra.gmra.mxu1 %v1084_v47 }
  0x27   :  { %688 = vmatpush.bf16.msrb.mxu1 %v1548_v33  ;;  %654 = vmatmul.bf16.vlgmr.msra.gmra.mxu2 %v1088_v44  ;;  %v1565_v33 = vld [vmem:[%s1864_s2] sm:$0xff]  ;;  %v1578_v44 = vld [vmem:[%s1865_s3 + $0x28] sm:$0xff] }
  0x28   :  { %702 = vmatpush.bf16.msrb.mxu2 %v1556_v42  ;;  %668 = vmatmul.bf16.vlgmr.msra.gmra.mxu3 %v1092_v46 }
  0x29   :  { %716 = vmatpush.bf16.msrb.mxu3 %v1564_v43 }
  0x2a   :  { %675 = vmatpush.bf16.msrb.mxu0 %v1539_v48 }
  0x2b   :  { %689 = vmatpush.bf16.msrb.mxu1 %v1547_v49 }
  0x2c   :  { %703 = vmatpush.bf16.msrb.mxu2 %v1555_v50  ;;  %v1577_v50 = vld [vmem:[%s1865_s3 + $0x20] sm:$0xff] }
  0x2d   :  { %717 = vmatpush.bf16.msrb.mxu3 %v1563_v51 }
  0x2e   :  { %676 = vmatpush.bf16.msrb.mxu0 %v1538_v52 }
  0x2f   :  { %690 = vmatpush.bf16.msrb.mxu1 %v1546_v53 }
  0x30   :  { %704 = vmatpush.bf16.msrb.mxu2 %v1554_v54 }
  0x31   :  { %718 = vmatpush.bf16.msrb.mxu3 %v1562_v55 }
  0x32   :  { %677 = vmatpush.bf16.msrb.mxu0 %v1537_v56 }
  0x33   :  { %691 = vmatpush.bf16.msrb.mxu1 %v1545_v57 }
  0x34   :  { %705 = vmatpush.bf16.msrb.mxu2 %v1553_v58 }
  0x35   :  { %719 = vmatpush.bf16.msrb.mxu3 %v1561_v59 }
  0x36   :  { %678 = vmatpush.bf16.msrb.mxu0 %v1536_v60 }
  0x37   :  { %692 = vmatpush.bf16.msrb.mxu1 %v1544_v61 }
  0x38   :  { %706 = vmatpush.bf16.msrb.mxu2 %v1552_v62 }
  0x39   :  { %720 = vmatpush.bf16.msrb.mxu3 %v1560_v63 }
  0x3a   :  { %679 = vmatpush.bf16.msrb.mxu0 %v1535_v0 }
  0x3b   :  { %693 = vmatpush.bf16.msrb.mxu1 %v1543_v1 }
  0x3c   :  { %707 = vmatpush.bf16.msrb.mxu2 %v1551_v2 }
  0x3d   :  { %721 = vmatpush.bf16.msrb.mxu3 %v1559_v3 }
  0x3e   :  { %680 = vmatpush.bf16.msrb.mxu0 %v1534_v4 }
  0x3f   :  { %694 = vmatpush.bf16.msrb.mxu1 %v1542_v5 }
  0x40   :  { %708 = vmatpush.bf16.msrb.mxu2 %v1550_v6 }
  0x41   :  { %722 = vmatpush.bf16.msrb.mxu3 %v1558_v7 }
  0x42   :  { %681 = vmatpush.bf16.msrb.mxu0 %v1533_v8  ;;  %v1576_v8 = vld [vmem:[%s1865_s3 + $0x18] sm:$0xff] }
  0x43   :  { %695 = vmatpush.bf16.msrb.mxu1 %v1541_v9  ;;  %v1575_v9 = vld [vmem:[%s1865_s3 + $0x10] sm:$0xff] }
  0x44   :  { %709 = vmatpush.bf16.msrb.mxu2 %v1549_v10  ;;  %v1574_v10 = vld [vmem:[%s1865_s3 + $0x8] sm:$0xff] }
  0x45   :  { %723 = vmatpush.bf16.msrb.mxu3 %v1557_v11  ;;  %682 = vmatmul.bf16.vlgmr.msrb.gmra.mxu0 %v1096_v20  ;;  %v1573_v11 = vld [vmem:[%s1865_s3] sm:$0xff] }
  0x46   :  { %696 = vmatmul.bf16.vlgmr.msrb.gmra.mxu1 %v1100_v21  ;;  %801 = vmatpush.bf16.msra.mxu0 %v1572_v24  ;;  %v1584_v24 = vld [vmem:[%s1866_s4 + $0x18] sm:$0xff] }
  0x47   :  { %710 = vmatmul.bf16.vlgmr.msrb.gmra.mxu2 %v1104_v22  ;;  %886 = vmatpush.bf16.msra.mxu1 %v1580_v39 }
  0x48   :  { %724 = vmatmul.bf16.vlgmr.msrb.gmra.mxu3 %v1108_v23  ;;  %971 = vmatpush.bf16.msra.mxu2 %v1588_v12 }
  0x4a   :  { %802 = vmatpush.bf16.msra.mxu0 %v1571_v25  ;;  %v1583_v25 = vld [vmem:[%s1866_s4 + $0x10] sm:$0xff] }
  0x4b   :  { %887 = vmatpush.bf16.msra.mxu1 %v1579_v40  ;;  %v1592_v40 = vld [vmem:[%s1867_s5 + $0x18] sm:$0xff] }
  0x4c   :  { %972 = vmatpush.bf16.msra.mxu2 %v1587_v13 }
  0x4e   :  { %803 = vmatpush.bf16.msra.mxu0 %v1570_v26  ;;  %v1582_v26 = vld [vmem:[%s1866_s4 + $0x8] sm:$0xff] }
  0x4f   :  { %888 = vmatpush.bf16.msra.mxu1 %v1578_v44 }
  0x50   :  { %973 = vmatpush.bf16.msra.mxu2 %v1586_v14 }
  0x52   :  { %804 = vmatpush.bf16.msra.mxu0 %v1569_v27  ;;  %v1581_v27 = vld [vmem:[%s1866_s4] sm:$0xff] }
  0x53   :  { %889 = vmatpush.bf16.msra.mxu1 %v1577_v50 }
  0x54   :  { %974 = vmatpush.bf16.msra.mxu2 %v1585_v15 }
  0x56   :  { %805 = vmatpush.bf16.msra.mxu0 %v1568_v28  ;;  %v1596_v28 = vld [vmem:[%s1867_s5 + $0x38] sm:$0xff] }
  0x57   :  { %890 = vmatpush.bf16.msra.mxu1 %v1576_v8  ;;  %1056 = vmatpush.bf16.msra.mxu3 %v1596_v28 }
  0x58   :  { %975 = vmatpush.bf16.msra.mxu2 %v1584_v24 }
  0x5a   :  { %806 = vmatpush.bf16.msra.mxu0 %v1567_v29  ;;  %v1595_v29 = vld [vmem:[%s1867_s5 + $0x30] sm:$0xff] }
  0x5b   :  { %891 = vmatpush.bf16.msra.mxu1 %v1575_v9  ;;  %1057 = vmatpush.bf16.msra.mxu3 %v1595_v29 }
  0x5c   :  { %976 = vmatpush.bf16.msra.mxu2 %v1583_v25 }
  0x5e   :  { %807 = vmatpush.bf16.msra.mxu0 %v1566_v31  ;;  %v1593_v31 = vld [vmem:[%s1867_s5 + $0x20] sm:$0xff] }
  0x5f   :  { %892 = vmatpush.bf16.msra.mxu1 %v1574_v10 }
  0x60   :  { %977 = vmatpush.bf16.msra.mxu2 %v1582_v26 }
  0x62   :  { %808 = vmatpush.bf16.msra.mxu0 %v1565_v33  ;;  %v1602_v33 = vld [vmem:[%s1870_s8] ss:$0 sm:$0xff] }
  0x63   :  { %893 = vmatpush.bf16.msra.mxu1 %v1573_v11 }
  0x64   :  { %978 = vmatpush.bf16.msra.mxu2 %v1581_v27 }
  0xa2   :  { %v627_v30 = vpop.f32.mrf.mxu0 }
  0xa3   :  { %v641_v32 = vpop.f32.mrf.mxu1  ;;  %v628_v37 = vadd.f32 %v1600_v34, %v627_v30  ;;  %v1594_v30 = vld [vmem:[%s1867_s5 + $0x28] sm:$0xff] }
  0xa4   :  { %1058 = vmatpush.bf16.msra.mxu3 %v1594_v30 }
  0xa5   :  { %v642_v42 = vadd.f32 %v641_v32, %v628_v37 }
  0xa8   :  { %1059 = vmatpush.bf16.msra.mxu3 %v1593_v31 }
  0xaa   :  { %v655_v35 = vpop.f32.mrf.mxu2  ;;  %v629_v38 = vpop.f32.mrf.mxu0 }
  0xab   :  { %v669_v36 = vpop.f32.mrf.mxu3  ;;  %v643_v41 = vpop.f32.mrf.mxu1  ;;  %v630_v43 = vadd.f32 %v1600_v34, %v629_v38  ;;  %v656_v47 = vadd.f32 %v655_v35, %v642_v42  ;;  %v1590_v42 = vld [vmem:[%s1867_s5 + $0x8] sm:$0xff] }
  0xac   :  { %1060 = vmatpush.bf16.msra.mxu3 %v1592_v40 }
  0xad   :  { %v644_v48 = vadd.f32 %v643_v41, %v630_v43  ;;  %v670_v52 = vadd.f32 %v669_v36, %v656_v47  ;;  %v1591_v41 = vld [vmem:[%s1867_s5 + $0x10] sm:$0xff]  ;;  %v1589_v43 = vld [vmem:[%s1867_s5] sm:$0xff] }
  0xb0   :  { %1061 = vmatpush.bf16.msra.mxu3 %v1591_v41 }
  0xb2   :  { %v657_v45 = vpop.f32.mrf.mxu2 }
  0xb3   :  { %v671_v46 = vpop.f32.mrf.mxu3  ;;  %v658_v53 = vadd.f32 %v657_v45, %v644_v48  ;;  %v1603_v45 = vld [vmem:[%s1871_s9] ss:$0 sm:$0xff] }
  0xb4   :  { %1062 = vmatpush.bf16.msra.mxu3 %v1590_v42 }
  0xb5   :  { %v672_v57 = vadd.f32 %v671_v46, %v658_v53 }
  0xb8   :  { %1063 = vmatpush.bf16.msra.mxu3 %v1589_v43 }
  0xc2   :  { %v683_v49 = vpop.f32.mrf.mxu0 }
  0xc3   :  { %v697_v51 = vpop.f32.mrf.mxu1  ;;  %v684_v54 = vadd.f32 %v683_v49, %v670_v52  ;;  %v1604_v52 = vld [vmem:[%s1872_s10] ss:$0 sm:$0xff] }
  0xc5   :  { %v698_v59 = vadd.f32 %v697_v51, %v684_v54 }
  0xca   :  { %v711_v55 = vpop.f32.mrf.mxu2  ;;  %v685_v58 = vpop.f32.mrf.mxu0 }
  0xcb   :  { %v725_v56 = vpop.f32.mrf.mxu3  ;;  %v686_v60 = vadd.f32 %v685_v58, %v672_v57  ;;  %v712_v61 = vadd.f32 %v711_v55, %v698_v59  ;;  %v699_v62 = vpop.f32.mrf.mxu1 }
  0xcd   :  { %v700_v63 = vadd.f32 %v699_v62, %v686_v60  ;;  %v726_v1 = vadd.f32 %v725_v56, %v712_v61 }
  0xcf   :  { %v730_v5 = vmax.f32 %v726_v1, 0.0 }
  0xd2   :  { %v713_v0 = vpop.f32.mrf.mxu2 }
  0xd3   :  { %v714_v2 = vadd.f32 %v713_v0, %v700_v63  ;;  %v727_v3 = vpop.f32.mrf.mxu3 }
  0xd5   :  { %v728_v4 = vadd.f32 %v727_v3, %v714_v2 }
  0xd7   :  { %v731_v6 = vmax.f32 %v728_v4, 0.0 }
  0xd9   :  { %v732_v7 = vpack.c.bf16 %v731_v6, %v730_v5 }
  0xdb   :  { %809 = vmatmul.bf16.vlgmr.msra.gmra.mxu0 %v732_v7 }
 0x158   :  { %v810_v16 = vpop.f32.mrf.mxu0 }
 0x159   :  { %v811_v18 = vadd.f32 %v1601_v17, %v810_v16 }
 0x15b   :  { %v815_v21 = vmax.f32 %v811_v18, 0.0 }
 0x160   :  { %v812_v19 = vpop.f32.mrf.mxu0 }
 0x161   :  { %v813_v20 = vadd.f32 %v1601_v17, %v812_v19 }
 0x163   :  { %v816_v22 = vmax.f32 %v813_v20, 0.0 }
 0x165   :  { %v817_v23 = vpack.c.bf16 %v816_v22, %v815_v21 }
 0x167   :  { %894 = vmatmul.bf16.vlgmr.msra.gmra.mxu1 %v817_v23 }
 0x1e4   :  { %v895_v32 = vpop.f32.mrf.mxu1 }
 0x1e5   :  { %v896_v34 = vadd.f32 %v1602_v33, %v895_v32 }
 0x1e7   :  { %v900_v37 = vmax.f32 %v896_v34, 0.0 }
 0x1ec   :  { %v897_v35 = vpop.f32.mrf.mxu1 }
 0x1ed   :  { %v898_v36 = vadd.f32 %v1602_v33, %v897_v35 }
 0x1ef   :  { %v901_v38 = vmax.f32 %v898_v36, 0.0 }
 0x1f1   :  { %v902_v39 = vpack.c.bf16 %v901_v38, %v900_v37 }
 0x1f3   :  { %979 = vmatmul.bf16.vlgmr.msra.gmra.mxu2 %v902_v39 }
 0x276   :  { %v980_v44 = vpop.f32.mrf.mxu2 }
 0x277   :  { %v981_v46 = vadd.f32 %v1603_v45, %v980_v44 }
 0x279   :  { %v985_v49 = vmax.f32 %v981_v46, 0.0 }
 0x27e   :  { %v982_v47 = vpop.f32.mrf.mxu2 }
 0x27f   :  { %v983_v48 = vadd.f32 %v1603_v45, %v982_v47 }
 0x281   :  { %v986_v50 = vmax.f32 %v983_v48, 0.0 }
 0x283   :  { %v987_v51 = vpack.c.bf16 %v986_v50, %v985_v49 }
 0x285   :  { %1064 = vmatmul.bf16.vlgmr.msra.gmra.mxu3 %v987_v51 }
 0x308   :  { %v1065_v53 = vpop.f32.mrf.mxu3 }
 0x309   :  { %v1066_v54 = vadd.f32 %v1604_v52, %v1065_v53 }
 0x30b   :  { %1070 = vst [vmem:[%s1873_s11] sm:$0xff] %v1066_v54 }
 0x310   :  { %v1067_v55 = vpop.f32.mrf.mxu3 }
 0x311   :  { %v1068_v56 = vadd.f32 %v1604_v52, %v1067_v55 }
 0x313   :  { %1071 = vst [vmem:[%s1873_s11 + $0x8] sm:$0xff] %v1068_v56 }
 0x314   :  { %1076 = vsyncpa [#allocation3], 1 }

</bundles_post_ra>
